<compile_context>
chip_gen: v6e
topology: v6e:2x2x1
jax: 0.10.0
libtpu: 0.0.40
codegen_flags: <defaults>
</compile_context>

<pallas_src>
import functools

import jax
import jax.numpy as jnp
from jax.experimental import pallas as pl
from jax.experimental.pallas import tpu as pltpu

_LANE = 128


def _round_up(v, m):
    return (v + m - 1) // m * m


def _pick_dst_tile(n_pad):
    # v6e/v7x MXU is 256-wide; prefer 256 dst tiles when they divide evenly.
    for t in (256, 128):
        if n_pad % t == 0:
            return t
    return n_pad


def _vmem_limit_bytes(num_rels, n_pad, tile_n, fin_pad, out_pad):
    adj_tile = num_rels * tile_n * n_pad * 2          # bf16, double-buffered
    x_full = n_pad * fin_pad * 2                      # resident src features
    wrel = num_rels * fin_pad * out_pad * 2
    wroot = fin_pad * out_pad * 2
    bias = out_pad * 4
    out_tile = tile_n * out_pad * 4
    need = 2 * adj_tile + x_full + wrel + wroot + bias + 2 * out_tile
    return int(min(64 << 20, max(32 << 20, need + (8 << 20))))


def _rgcn_layer_kernel(adj_ref, x_ref, wrel_ref, wroot_ref, b_ref, o_ref, *,
                       num_rels, tile_n, apply_relu):
    """One dst-node tile of one RGCNConv layer.

    adj_ref  : (R, T, Np)  bf16  mean-normalised adjacency rows for this tile
    x_ref    : (Np, Fp)    bf16  full (resident) src features
    wrel_ref : (R, Fp, Op) bf16  per-relation weights
    wroot_ref: (Fp, Op)    bf16  root (self) weight
    b_ref    : (1, Op)     f32   bias
    o_ref    : (T, Op)           output tile
    """
    R = num_rels
    T = tile_n
    n_pad = x_ref.shape[0]

    # dst-tile features for the root (self) term, sliced from the resident
    # src block (offset is a multiple of the tile size).
    row0 = pl.multiple_of(pl.program_id(0) * T, T)
    x_dst = x_ref[pl.ds(row0, T), :]                                # (T, Fp)

    # root term + bias in an f32 accumulator.
    acc = jnp.dot(x_dst, wroot_ref[...], preferred_element_type=jnp.float32)
    acc = acc + b_ref[...]

    # Single merged per-relation aggregation matmul: (R*T, Np) @ (Np, Fp).
    adj2d = adj_ref[...].reshape(R * T, n_pad)
    agg = jnp.dot(adj2d, x_ref[...], preferred_element_type=jnp.float32)

    # Per-relation projection, accumulated directly (no cat scratch buffers).
    for r in range(R):
        agg_r = agg[r * T:(r + 1) * T, :].astype(jnp.bfloat16)
        acc = acc + jnp.dot(agg_r, wrel_ref[r],
                            preferred_element_type=jnp.float32)

    if apply_relu:
        acc = jnp.maximum(acc, 0.0)
    o_ref[...] = acc.astype(o_ref.dtype)


def _rgcn_layer_call(adj_p, x_p, wrel_p, wroot_p, b_p, *, apply_relu,
                     out_dtype, tile_n):
    R, n_pad, _ = adj_p.shape
    fin_pad = x_p.shape[1]
    out_pad = wroot_p.shape[1]
    grid_n = n_pad // tile_n

    kernel = functools.partial(_rgcn_layer_kernel, num_rels=R, tile_n=tile_n,
                               apply_relu=apply_relu)

    return pl.pallas_call(
        kernel,
        out_shape=jax.ShapeDtypeStruct((n_pad, out_pad), out_dtype),
        grid_spec=pltpu.PrefetchScalarGridSpec(
            num_scalar_prefetch=0,
            grid=(grid_n,),
            in_specs=[
                pl.BlockSpec((R, tile_n, n_pad), lambda i: (0, i, 0)),
                pl.BlockSpec((n_pad, fin_pad), lambda i: (0, 0)),
                pl.BlockSpec((R, fin_pad, out_pad), lambda i: (0, 0, 0)),
                pl.BlockSpec((fin_pad, out_pad), lambda i: (0, 0)),
                pl.BlockSpec((1, out_pad), lambda i: (0, 0)),
            ],
            out_specs=pl.BlockSpec((tile_n, out_pad), lambda i: (i, 0)),
        ),
        compiler_params=pltpu.CompilerParams(
            dimension_semantics=("parallel",),
            vmem_limit_bytes=_vmem_limit_bytes(R, n_pad, tile_n, fin_pad,
                                               out_pad)),
    )(adj_p, x_p, wrel_p, wroot_p, b_p)


def _pad_bf16(a, shape):
    buf = jnp.zeros(shape, jnp.bfloat16)
    return jax.lax.dynamic_update_slice(buf, a.astype(jnp.bfloat16),
                                        (0,) * a.ndim)


def _pad_bias(b, width):
    return jnp.zeros((1, width), jnp.float32).at[0, :b.shape[0]].set(b)


def build_mean_adjacency_padded(edge_index, edge_type, num_rels, n_pad):
    """Mean-normalised dense per-relation adjacency, built directly at padded
    shape: adj[r, dst, src] = count(src->dst, rel r) / max(deg_r(dst), 1),
    cast once to bf16 (PyG RGCNConv default aggr='mean')."""
    src, dst = edge_index[0], edge_index[1]
    counts = jnp.zeros((num_rels, n_pad, n_pad), jnp.float32)
    counts = counts.at[edge_type, dst, src].add(1.0)
    deg = counts.sum(axis=-1, keepdims=True)
    adj = counts / jnp.maximum(deg, 1.0)
    return adj.astype(jnp.bfloat16)


def rgcn_forward(x, edge_index, edge_type, w_rel1, w_root1, b1,
                 w_rel2, w_root2, b2, num_rels):
    """x: [N, Fin] f32. Returns [N, Fout] f32."""
    N, Fin = x.shape
    Hid = w_root1.shape[1]
    Fout = w_root2.shape[1]

    n_pad = _round_up(N, _LANE)
    fin_pad = _round_up(Fin, _LANE)
    hid_pad = _round_up(Hid, _LANE)
    fout_pad = _round_up(Fout, _LANE)
    tile_n = _pick_dst_tile(n_pad)

    adj_p = build_mean_adjacency_padded(edge_index, edge_type, num_rels, n_pad)

    x_p = _pad_bf16(x, (n_pad, fin_pad))
    wrel1_p = _pad_bf16(w_rel1, (num_rels, fin_pad, hid_pad))
    wroot1_p = _pad_bf16(w_root1, (fin_pad, hid_pad))
    b1_p = _pad_bias(b1, hid_pad)
    wrel2_p = _pad_bf16(w_rel2, (num_rels, hid_pad, fout_pad))
    wroot2_p = _pad_bf16(w_root2, (hid_pad, fout_pad))
    b2_p = _pad_bias(b2, fout_pad)

    # Layer 1 (+ ReLU), bf16 output feeds layer 2's MXU directly.
    h_p = _rgcn_layer_call(adj_p, x_p, wrel1_p, wroot1_p, b1_p,
                           apply_relu=True, out_dtype=jnp.bfloat16,
                           tile_n=tile_n)
    # Padded dst rows of h are relu(b1); harmless for layer 2 (their src
    # columns in adj are zero) but zero them so the HBM copy of h is clean.
    if N != n_pad:
        h_p = h_p.at[N:, :].set(0)

    out_p = _rgcn_layer_call(adj_p, h_p, wrel2_p, wroot2_p, b2_p,
                             apply_relu=False, out_dtype=jnp.float32,
                             tile_n=tile_n)
    return out_p[:N, :Fout]


class RGCNPallas:
    """Mirrors RGCN(in_feat, hidden_feat, out_feat, num_rels).forward."""

    def __init__(self, key, in_feat, hidden_feat, out_feat, num_rels):
        ks = jax.random.split(key, 4)
        s1 = 1.0 / jnp.sqrt(in_feat)
        s2 = 1.0 / jnp.sqrt(hidden_feat)
        self.w_rel1 = (jax.random.normal(ks[0], (num_rels, in_feat, hidden_feat),
                                         jnp.float32) * s1)
        self.w_root1 = jax.random.normal(ks[1], (in_feat, hidden_feat),
                                         jnp.float32) * s1
        self.b1 = jnp.zeros((hidden_feat,), jnp.float32)
        self.w_rel2 = (jax.random.normal(ks[2], (num_rels, hidden_feat, out_feat),
                                         jnp.float32) * s2)
        self.w_root2 = jax.random.normal(ks[3], (hidden_feat, out_feat),
                                         jnp.float32) * s2
        self.b2 = jnp.zeros((out_feat,), jnp.float32)
        self.num_rels = num_rels

    def __call__(self, x, edge_index, edge_type):
        return rgcn_forward(x, edge_index, edge_type,
                            self.w_rel1, self.w_root1, self.b1,
                            self.w_rel2, self.w_root2, self.b2,
                            self.num_rels)


def rgcn_reference(model, x, edge_index, edge_type):
    """Pure-JAX f32 reference (matches the PyTorch module's forward)."""
    N = x.shape[0]
    src, dst = edge_index[0], edge_index[1]
    counts = jnp.zeros((model.num_rels, N, N), jnp.float32)
    counts = counts.at[edge_type, dst, src].add(1.0)
    deg = counts.sum(axis=-1, keepdims=True)
    adj = counts / jnp.maximum(deg, 1.0)

    def layer(x, w_rel, w_root, b):
        out = x @ w_root + b
        agg = jnp.einsum('rnm,mf->rnf', adj, x)
        return out + jnp.einsum('rnf,rfo->no', agg, w_rel)

    h = jnp.maximum(layer(x, model.w_rel1, model.w_root1, model.b1), 0.0)
    return layer(h, model.w_rel2, model.w_root2, model.b2)


if __name__ == "__main__":
    key = jax.random.PRNGKey(0)
    k_x, k_src, k_dst, k_rel, k_model = jax.random.split(key, 5)

    # Synthetic graph consistent with the module's forward:
    #   x: [num_nodes, in_feat=64], edge_index: [2, E], edge_type: [E]
    num_nodes, in_feat, hidden_feat, out_feat = 64, 64, 32, 16
    num_rels, num_edges = 4, 256

    x = jax.random.normal(k_x, (num_nodes, in_feat), jnp.float32)
    edge_index = jnp.stack([
        jax.random.randint(k_src, (num_edges,), 0, num_nodes),
        jax.random.randint(k_dst, (num_edges,), 0, num_nodes),
    ])
    edge_type = jax.random.randint(k_rel, (num_edges,), 0, num_rels)

    model = RGCNPallas(k_model, in_feat, hidden_feat, out_feat, num_rels)

    out = model(x, edge_index, edge_type)
    jax.block_until_ready(out)

    ref = rgcn_reference(model, x, edge_index, edge_type)
    assert out.shape == (num_nodes, out_feat)

    # bf16 MXU operands (x, h, normalised adj, weights) with f32 accumulation
    # across two layers: tolerance loosened accordingly.
    scale = float(jnp.max(jnp.abs(ref)))
    err = float(jnp.max(jnp.abs(out - ref)))
    assert err <= 5e-2 * scale + 1e-3, f"max abs err {err} vs scale {scale}"

    print("KERNEL_OK")
</pallas_src>

<mosaic_0001>
module attributes {stable_mosaic.version = 11 : i64} {
  func.func @_rgcn_layer_kernel(%arg0: i32, %arg1: memref<4x128x128xbf16, #tpu.memory_space<vmem>>, %arg2: memref<128x128xbf16, #tpu.memory_space<vmem>>, %arg3: memref<4x128x128xbf16, #tpu.memory_space<vmem>>, %arg4: memref<128x128xbf16, #tpu.memory_space<vmem>>, %arg5: memref<1x128xf32, #tpu.memory_space<vmem>>, %arg6: memref<128x128xbf16, #tpu.memory_space<vmem>>) attributes {dimension_semantics = [#tpu.dimension_semantics<parallel>], iteration_bounds = array<i64: 1>, scalar_prefetch = 0 : i64, scratch_operands = 0 : i64, tpu.core_type = #tpu.core_type<tc>, window_params = [{transform_indices = @transform_0, window_bounds = array<i64: 4, 128, 128>}, {pipeline_mode = #tpu.pipeline_mode<synchronous>, transform_indices = @transform_1, window_bounds = array<i64: 128, 128>}, {pipeline_mode = #tpu.pipeline_mode<synchronous>, transform_indices = @transform_2, window_bounds = array<i64: 4, 128, 128>}, {pipeline_mode = #tpu.pipeline_mode<synchronous>, transform_indices = @transform_3, window_bounds = array<i64: 128, 128>}, {pipeline_mode = #tpu.pipeline_mode<synchronous>, transform_indices = @transform_4, window_bounds = array<i64: 1, 128>}, {transform_indices = @transform_5, window_bounds = array<i64: 128, 128>}]} {
    %c128_i32 = arith.constant 128 : i32
    %0 = arith.muli %arg0, %c128_i32 : i32
    %1 = tpu.assume_multiple %0, 128 : i32
    %2 = arith.index_cast %1 : i32 to index
    %c0 = arith.constant 0 : index
    %3 = vector.load %arg2[%2, %c0] : memref<128x128xbf16, #tpu.memory_space<vmem>>, vector<128x128xbf16>
    %c0_0 = arith.constant 0 : index
    %c0_1 = arith.constant 0 : index
    %4 = vector.load %arg4[%c0_0, %c0_1] : memref<128x128xbf16, #tpu.memory_space<vmem>>, vector<128x128xbf16>
    %cst = arith.constant dense<0.000000e+00> : vector<128x128xf32>
    %5 = tpu.matmul %3, %4, %cst {dimension_numbers = #tpu.dot_dimension_numbers<[1], [0], [0], [1], [0, 0, 1, 1], [], []>} : vector<128x128xbf16>, vector<128x128xbf16>, vector<128x128xf32> -> vector<128x128xf32>
    %c0_2 = arith.constant 0 : index
    %c0_3 = arith.constant 0 : index
    %6 = vector.load %arg5[%c0_2, %c0_3] : memref<1x128xf32, #tpu.memory_space<vmem>>, vector<1x128xf32>
    %7 = vector.broadcast %6 : vector<1x128xf32> to vector<128x128xf32>
    %8 = arith.addf %5, %7 : vector<128x128xf32>
    %c0_4 = arith.constant 0 : index
    %c0_5 = arith.constant 0 : index
    %c0_6 = arith.constant 0 : index
    %9 = vector.load %arg1[%c0_4, %c0_5, %c0_6] : memref<4x128x128xbf16, #tpu.memory_space<vmem>>, vector<4x128x128xbf16>
    %10 = vector.shape_cast %9 : vector<4x128x128xbf16> to vector<512x128xbf16>
    %c0_7 = arith.constant 0 : index
    %c0_8 = arith.constant 0 : index
    %11 = vector.load %arg2[%c0_7, %c0_8] : memref<128x128xbf16, #tpu.memory_space<vmem>>, vector<128x128xbf16>
    %cst_9 = arith.constant dense<0.000000e+00> : vector<512x128xf32>
    %12 = tpu.matmul %10, %11, %cst_9 {dimension_numbers = #tpu.dot_dimension_numbers<[1], [0], [0], [1], [0, 0, 1, 1], [], []>} : vector<512x128xbf16>, vector<128x128xbf16>, vector<512x128xf32> -> vector<512x128xf32>
    %13 = vector.extract_strided_slice %12 {offsets = [0, 0], sizes = [128, 128], strides = [1, 1]} : vector<512x128xf32> to vector<128x128xf32>
    %14 = arith.truncf %13 : vector<128x128xf32> to vector<128x128xbf16>
    %c0_10 = arith.constant 0 : index
    %c0_11 = arith.constant 0 : index
    %c0_12 = arith.constant 0 : index
    %15 = vector.load %arg3[%c0_10, %c0_11, %c0_12] : memref<4x128x128xbf16, #tpu.memory_space<vmem>>, vector<1x128x128xbf16>
    %16 = vector.shape_cast %15 : vector<1x128x128xbf16> to vector<128x128xbf16>
    %cst_13 = arith.constant dense<0.000000e+00> : vector<128x128xf32>
    %17 = tpu.matmul %14, %16, %cst_13 {dimension_numbers = #tpu.dot_dimension_numbers<[1], [0], [0], [1], [0, 0, 1, 1], [], []>} : vector<128x128xbf16>, vector<128x128xbf16>, vector<128x128xf32> -> vector<128x128xf32>
    %18 = arith.addf %8, %17 : vector<128x128xf32>
    %19 = vector.extract_strided_slice %12 {offsets = [128, 0], sizes = [128, 128], strides = [1, 1]} : vector<512x128xf32> to vector<128x128xf32>
    %20 = arith.truncf %19 : vector<128x128xf32> to vector<128x128xbf16>
    %c1 = arith.constant 1 : index
    %c0_14 = arith.constant 0 : index
    %c0_15 = arith.constant 0 : index
    %21 = vector.load %arg3[%c1, %c0_14, %c0_15] : memref<4x128x128xbf16, #tpu.memory_space<vmem>>, vector<1x128x128xbf16>
    %22 = vector.shape_cast %21 : vector<1x128x128xbf16> to vector<128x128xbf16>
    %cst_16 = arith.constant dense<0.000000e+00> : vector<128x128xf32>
    %23 = tpu.matmul %20, %22, %cst_16 {dimension_numbers = #tpu.dot_dimension_numbers<[1], [0], [0], [1], [0, 0, 1, 1], [], []>} : vector<128x128xbf16>, vector<128x128xbf16>, vector<128x128xf32> -> vector<128x128xf32>
    %24 = arith.addf %18, %23 : vector<128x128xf32>
    %25 = vector.extract_strided_slice %12 {offsets = [256, 0], sizes = [128, 128], strides = [1, 1]} : vector<512x128xf32> to vector<128x128xf32>
    %26 = arith.truncf %25 : vector<128x128xf32> to vector<128x128xbf16>
    %c2 = arith.constant 2 : index
    %c0_17 = arith.constant 0 : index
    %c0_18 = arith.constant 0 : index
    %27 = vector.load %arg3[%c2, %c0_17, %c0_18] : memref<4x128x128xbf16, #tpu.memory_space<vmem>>, vector<1x128x128xbf16>
    %28 = vector.shape_cast %27 : vector<1x128x128xbf16> to vector<128x128xbf16>
    %cst_19 = arith.constant dense<0.000000e+00> : vector<128x128xf32>
    %29 = tpu.matmul %26, %28, %cst_19 {dimension_numbers = #tpu.dot_dimension_numbers<[1], [0], [0], [1], [0, 0, 1, 1], [], []>} : vector<128x128xbf16>, vector<128x128xbf16>, vector<128x128xf32> -> vector<128x128xf32>
    %30 = arith.addf %24, %29 : vector<128x128xf32>
    %31 = vector.extract_strided_slice %12 {offsets = [384, 0], sizes = [128, 128], strides = [1, 1]} : vector<512x128xf32> to vector<128x128xf32>
    %32 = arith.truncf %31 : vector<128x128xf32> to vector<128x128xbf16>
    %c3 = arith.constant 3 : index
    %c0_20 = arith.constant 0 : index
    %c0_21 = arith.constant 0 : index
    %33 = vector.load %arg3[%c3, %c0_20, %c0_21] : memref<4x128x128xbf16, #tpu.memory_space<vmem>>, vector<1x128x128xbf16>
    %34 = vector.shape_cast %33 : vector<1x128x128xbf16> to vector<128x128xbf16>
    %cst_22 = arith.constant dense<0.000000e+00> : vector<128x128xf32>
    %35 = tpu.matmul %32, %34, %cst_22 {dimension_numbers = #tpu.dot_dimension_numbers<[1], [0], [0], [1], [0, 0, 1, 1], [], []>} : vector<128x128xbf16>, vector<128x128xbf16>, vector<128x128xf32> -> vector<128x128xf32>
    %36 = arith.addf %30, %35 : vector<128x128xf32>
    %cst_23 = arith.constant 0.000000e+00 : f32
    %37 = vector.broadcast %cst_23 : f32 to vector<128x128xf32>
    %38 = arith.maximumf %36, %37 : vector<128x128xf32>
    %39 = arith.truncf %38 : vector<128x128xf32> to vector<128x128xbf16>
    %c0_24 = arith.constant 0 : index
    %c0_25 = arith.constant 0 : index
    %40 = vector.load %arg6[%c0_24, %c0_25] : memref<128x128xbf16, #tpu.memory_space<vmem>>, vector<128x128xbf16>
    tpu.vector_store %arg6[%c0_24, %c0_25], %39 {strides = array<i32>} : memref<128x128xbf16, #tpu.memory_space<vmem>>, vector<128x128xbf16>,
    return
  }
  func.func @transform_0(%arg0: i32) -> (i32, i32, i32) {
    %c0_i32 = arith.constant 0 : i32
    %c0_i32_0 = arith.constant 0 : i32
    %c0_i32_1 = arith.constant 0 : i32
    return %c0_i32, %arg0, %c0_i32_0 : i32, i32, i32
  }
  func.func @transform_1(%arg0: i32) -> (i32, i32) {
    %c0_i32 = arith.constant 0 : i32
    %c0_i32_0 = arith.constant 0 : i32
    %c0_i32_1 = arith.constant 0 : i32
    return %c0_i32, %c0_i32_0 : i32, i32
  }
  func.func @transform_2(%arg0: i32) -> (i32, i32, i32) {
    %c0_i32 = arith.constant 0 : i32
    %c0_i32_0 = arith.constant 0 : i32
    %c0_i32_1 = arith.constant 0 : i32
    %c0_i32_2 = arith.constant 0 : i32
    return %c0_i32, %c0_i32_0, %c0_i32_1 : i32, i32, i32
  }
  func.func @transform_3(%arg0: i32) -> (i32, i32) {
    %c0_i32 = arith.constant 0 : i32
    %c0_i32_0 = arith.constant 0 : i32
    %c0_i32_1 = arith.constant 0 : i32
    return %c0_i32, %c0_i32_0 : i32, i32
  }
  func.func @transform_4(%arg0: i32) -> (i32, i32) {
    %c0_i32 = arith.constant 0 : i32
    %c0_i32_0 = arith.constant 0 : i32
    %c0_i32_1 = arith.constant 0 : i32
    return %c0_i32, %c0_i32_0 : i32, i32
  }
  func.func @transform_5(%arg0: i32) -> (i32, i32) {
    %c0_i32 = arith.constant 0 : i32
    %c0_i32_0 = arith.constant 0 : i32
    return %arg0, %c0_i32 : i32, i32
  }
}

</mosaic_0001>

<bundles_post_ra>
// kernel: tpu_custom_call.1
= control target key start
LH: loop header
LB: loop body
LE: loop exit
PB: predicated region body
PF: predicated region fallthrough
CT: control target
= control target key end

     0   :  { %10 = vsyncpa [#allocation3], 0  ;;  %s2726_s0 = inlined_call_operand.hbm [shape: bf16[4,128,128], index: 0, kind: input, shape index: {}]   ;;  %s2727_s1 = inlined_call_operand.hbm [shape: bf16[128,128], index: 1, kind: input, shape index: {}]   ;;  %s2728_s2 = inlined_call_operand.hbm [shape: bf16[4,128,128], index: 2, kind: input, shape index: {}]   ;;  %s2729_s3 = inlined_call_operand.hbm [shape: bf16[128,128], index: 3, kind: input, shape index: {}]   ;;  %s2730_s4 = inlined_call_operand.vmem [shape: f32[1,128], index: 4, kind: input, shape index: {}]   ;;  %s2731_s5 = inlined_call_operand.hbm [shape: bf16[128,128], index: 5, kind: output, shape index: {}]  }
   0x1   :  { %11 = vsyncpa [#allocation6], 0 }
   0x2   :  { %12 = vsyncpa [#allocation9], 0 }
   0x3   :  { %13 = vsyncpa [#allocation4], 0  ;;  %s2530_s18 = smov [#allocation5]   ;;  %s2531_s20 = smov [#allocation2]  }
   0x4   :  { %s31_s19 = sshll.u32 %s2530_s18, 4  ;;  %s19_s21 = sshll.u32 %s2531_s20, 4  ;;  %s32_s19 = int_to_ptr.vmem [resolvable:$true] %s31_s19  ;;  %s20_s21 = int_to_ptr.vmem [resolvable:$true] %s19_s21 }
   0x5   :  { %s2430_s22 = scalar_lea.vmem %s32_s19, 1024  ;;  %p2435_p1 = scmp.lt.s32.totalorder %s32_s19, %s32_s19 }
   0x6   :  { %p2431_p0 = scmp.ne.s32.totalorder %s32_s19, %s2430_s22  ;;  %p2436_p2 = scmp.lt.s32.totalorder %s2430_s22, %s2430_s22 }
   0x8   :  { %p2437_p3 = por %p2436_p2, %p2435_p1 }
   0xa   :  { %p2438_p4 = pnand %p2437_p3, %p2431_p0 }
   0xc   :  { %2441 = shalt.err (!%p2438_p4)
}
   0xd   :  { %s2532_s23 = smov 64   ;;  %s2533_s24 = smov 4  }
   0xe   :  { %37 = dma.hbm_to_vmem [thread:$0]  %s2727_s1, 1024, %s32_s19, [#allocation6], %s2532_s23, %s2532_s23, %s2533_s24  }
   0xf   :  { %s2450_s27 = scalar_lea.vmem %s20_s21, 4096  ;;  %p2455_p6 = scmp.lt.s32.totalorder %s20_s21, %s20_s21 }
  0x10   :  { %p2451_p5 = scmp.ne.s32.totalorder %s20_s21, %s2450_s27  ;;  %p2456_p7 = scmp.lt.s32.totalorder %s2450_s27, %s2450_s27 }
  0x12   :  { %p2457_p8 = por %p2456_p7, %p2455_p6 }
  0x14   :  { %p2458_p9 = pnand %p2457_p8, %p2451_p5 }
  0x16   :  { %2461 = shalt.err (!%p2458_p9)
}
  0x17   :  { %25 = dma.hbm_to_vmem [thread:$0]  %s2726_s0, 4096, %s20_s21, [#allocation3], %s2532_s23, %s2532_s23, %s2533_s24  }
  0x18   :  { %s2534_s30 = smov [#allocation7]   ;;  %s2535_s7 = smov [#allocation8]  }
  0x19   :  { %s43_s6 = sshll.u32 %s2534_s30, 4  ;;  %s55_s8 = sshll.u32 %s2535_s7, 4  ;;  %s44_s6 = int_to_ptr.vmem [resolvable:$true] %s43_s6  ;;  %s56_s8 = int_to_ptr.vmem [resolvable:$true] %s55_s8 }
  0x1a   :  { %s2470_s1 = scalar_lea.vmem %s44_s6, 4096  ;;  %p2475_p11 = scmp.lt.s32.totalorder %s44_s6, %s44_s6 }
  0x1b   :  { %p2471_p10 = scmp.ne.s32.totalorder %s44_s6, %s2470_s1  ;;  %p2476_p12 = scmp.lt.s32.totalorder %s2470_s1, %s2470_s1 }
  0x1d   :  { %p2477_p13 = por %p2476_p12, %p2475_p11 }
  0x1f   :  { %p2478_p0 = pnand %p2477_p13, %p2471_p10 }
  0x21   :  { %2481 = shalt.err (!%p2478_p0)
}
  0x22   :  { %49 = dma.hbm_to_vmem [thread:$0]  %s2728_s2, 4096, %s44_s6, [#allocation6], %s2532_s23, %s2532_s23, %s2533_s24  }
  0x23   :  { %s2490_s0 = scalar_lea.vmem %s56_s8, 1024  ;;  %p2495_p2 = scmp.lt.s32.totalorder %s56_s8, %s56_s8 }
  0x24   :  { %p2491_p1 = scmp.ne.s32.totalorder %s56_s8, %s2490_s0  ;;  %p2496_p3 = scmp.lt.s32.totalorder %s2490_s0, %s2490_s0 }
  0x26   :  { %p2497_p4 = por %p2496_p3, %p2495_p2 }
  0x28   :  { %p2498_p5 = pnand %p2497_p4, %p2491_p1 }
  0x2a   :  { %2501 = shalt.err (!%p2498_p5)
}
  0x2b   :  { %61 = dma.hbm_to_vmem [thread:$0]  %s2729_s3, 1024, %s56_s8, [#allocation9], %s2532_s23, %s2532_s23, %s2533_s24  }
  0x2c   :  { %2522 = dma.done.wait [#allocation3], 4096  }
  0x2d   :  { %2523 = vsyncadd [#allocation3], 4294963200 }
  0x2e   :  { %2524 = dma.done.wait [#allocation6], 5120  }
  0x2f   :  { %2525 = vsyncadd [#allocation6], 4294962176 }
  0x30   :  { %2526 = dma.done.wait [#allocation9], 1024  }
  0x31   :  { %2527 = vsyncadd [#allocation9], 4294966272  ;;  %v2334_v0 = vld [vmem:[#allocation5 + $0x38] sm:$0xff]   ;;  %v2335_v1 = vld [vmem:[#allocation5 + $0x30] sm:$0xff]  }
  0x32   :  { %2103 = vmatprep.subr.bf16.mxu1 %v2334_v0  ;;  %v2336_v2 = vld [vmem:[#allocation5 + $0x28] sm:$0xff]   ;;  %v2337_v3 = vld [vmem:[#allocation5 + $0x20] sm:$0xff]   ;;  %v2338_v5 = vld [vmem:[#allocation5 + $0x18] sm:$0xff]  }
  0x33   :  { %2104 = vmatpush3.bf16.msra.mxu1 %v2334_v0  ;;  %v2342_v4 = vld [vmem:[#allocation2] sm:$0xff]   ;;  %v2339_v6 = vld [vmem:[#allocation5 + $0x10] sm:$0xff]   ;;  %v2340_v7 = vld [vmem:[#allocation5 + $0x8] sm:$0xff]  }
  0x34   :  { %2105 = vmatprep.subr.bf16.mxu1 %v2335_v1  ;;  %2119 = vmatprep.mubr.bf16.mxu1 %v2342_v4  ;;  %v2341_v8 = vld [vmem:[#allocation5] sm:$0xff]   ;;  %v2343_v9 = vld [vmem:[#allocation2 + $0x8] sm:$0xff]   ;;  %v2344_v10 = vld [vmem:[#allocation2 + $0x10] sm:$0xff]  }
  0x35   :  { %v2345_v11 = vld [vmem:[#allocation2 + $0x18] sm:$0xff]   ;;  %v2346_v12 = vld [vmem:[#allocation2 + $0x20] sm:$0xff]   ;;  %v2375_v14 = vld [vmem:[#allocation8 + $0x30] sm:$0xff]  }
  0x36   :  { %v2374_v13 = vld [vmem:[#allocation8 + $0x38] sm:$0xff]   ;;  %v2376_v15 = vld [vmem:[#allocation8 + $0x28] sm:$0xff]   ;;  %v2348_v17 = vld [vmem:[#allocation2 + $0x30] sm:$0xff]  }
  0x37   :  { %2106 = vmatpush3.bf16.msra.mxu1 %v2335_v1  ;;  %2071 = vmatprep.subr.bf16.mxu0 %v2374_v13  ;;  %v2347_v16 = vld [vmem:[#allocation2 + $0x28] sm:$0xff]   ;;  %v2377_v18 = vld [vmem:[#allocation8 + $0x20] sm:$0xff]   ;;  %v2378_v20 = vld [vmem:[#allocation8 + $0x18] sm:$0xff]  }
  0x38   :  { %2107 = vmatprep.subr.bf16.mxu1 %v2336_v2  ;;  %2072 = vmatpush3.bf16.msra.mxu0 %v2374_v13  ;;  %v2382_v19 = vld [vmem:[#allocation5] sm:$0xff]   ;;  %v2349_v21 = vld [vmem:[#allocation2 + $0x38] sm:$0xff]   ;;  %v2379_v23 = vld [vmem:[#allocation8 + $0x10] sm:$0xff]  }
  0x39   :  { %2073 = vmatprep.subr.bf16.mxu0 %v2375_v14  ;;  %2087 = vmatprep.mubr.bf16.mxu0 %v2382_v19  ;;  %v2350_v22 = vld [vmem:[#allocation2 + $0x40] sm:$0xff]   ;;  %v2591_v24 = vld [vmem:[#allocation7 + $0xf8] sm:$0xff]   ;;  %v2351_v25 = vld [vmem:[#allocation2 + $0x48] sm:$0xff]  }
  0x3a   :  { %v2380_v26 = vld [vmem:[#allocation8 + $0x8] sm:$0xff]   ;;  %v2352_v27 = vld [vmem:[#allocation2 + $0x50] sm:$0xff]   ;;  %v2381_v28 = vld [vmem:[#allocation8] sm:$0xff]  }
  0x3b   :  { %2108 = vmatpush3.bf16.msra.mxu1 %v2336_v2  ;;  %v2384_v29 = vld [vmem:[#allocation7 + $0x38] sm:$0xff]   ;;  %v2383_v31 = vld [vmem:[#allocation5 + $0x8] sm:$0xff]   ;;  %v2354_v32 = vld [vmem:[#allocation2 + $0x60] sm:$0xff]  }
  0x3c   :  { %2109 = vmatprep.subr.bf16.mxu1 %v2337_v3  ;;  %2074 = vmatpush3.bf16.msra.mxu0 %v2375_v14  ;;  %v2353_v30 = vld [vmem:[#allocation2 + $0x58] sm:$0xff]   ;;  %v2385_v33 = vld [vmem:[#allocation7 + $0x30] sm:$0xff]   ;;  %v2388_v35 = vld [vmem:[#allocation7 + $0x28] sm:$0xff]  }
  0x3d   :  { %2075 = vmatprep.subr.bf16.mxu0 %v2376_v15  ;;  %v2386_v34 = vld [vmem:[#allocation5 + $0x10] sm:$0xff]   ;;  %v2355_v36 = vld [vmem:[#allocation2 + $0x68] sm:$0xff]   ;;  %v2387_v37 = vld [vmem:[#allocation5 + $0x18] sm:$0xff]  }
  0x3e   :  { %v2356_v38 = vld [vmem:[#allocation2 + $0x70] sm:$0xff]   ;;  %v2389_v39 = vld [vmem:[#allocation7 + $0x20] sm:$0xff]   ;;  %v2393_v41 = vld [vmem:[#allocation7 + $0x18] sm:$0xff]  }
  0x3f   :  { %2110 = vmatpush3.bf16.msra.mxu1 %v2337_v3  ;;  %v2390_v40 = vld [vmem:[#allocation5 + $0x20] sm:$0xff]   ;;  %v2357_v42 = vld [vmem:[#allocation2 + $0x78] sm:$0xff]   ;;  %v2392_v43 = vld [vmem:[#allocation5 + $0x28] sm:$0xff]  }
  0x40   :  { %2111 = vmatprep.subr.bf16.mxu1 %v2338_v5  ;;  %2076 = vmatpush3.bf16.msra.mxu0 %v2376_v15  ;;  %v2358_v44 = vld [vmem:[#allocation2 + $0x80] sm:$0xff]   ;;  %v2394_v45 = vld [vmem:[#allocation7 + $0x10] sm:$0xff]   ;;  %v2359_v46 = vld [vmem:[#allocation2 + $0x88] sm:$0xff]  }
  0x41   :  { %2077 = vmatprep.subr.bf16.mxu0 %v2377_v18  ;;  %v2360_v47 = vld [vmem:[#allocation2 + $0x90] sm:$0xff]   ;;  %v2396_v49 = vld [vmem:[#allocation5 + $0x38] sm:$0xff]   ;;  %v2397_v50 = vld [vmem:[#allocation7 + $0x8] sm:$0xff]  }
  0x42   :  { %v2395_v48 = vld [vmem:[#allocation5 + $0x30] sm:$0xff]   ;;  %v2361_v51 = vld [vmem:[#allocation2 + $0x98] sm:$0xff]   ;;  %v2398_v52 = vld [vmem:[#allocation7] sm:$0xff]  }
  0x43   :  { %2112 = vmatpush3.bf16.msra.mxu1 %v2338_v5  ;;  %v2362_v53 = vld [vmem:[#allocation2 + $0xa0] sm:$0xff]   ;;  %v2400_v54 = vld [vmem:[#allocation7 + $0x78] sm:$0xff]   ;;  %v2595_v55 = vld [vmem:[#allocation7 + $0xf0] sm:$0xff]  }
  0x44   :  { %2113 = vmatprep.subr.bf16.mxu1 %v2339_v6  ;;  %2078 = vmatpush3.bf16.msra.mxu0 %v2377_v18  ;;  %v2363_v56 = vld [vmem:[#allocation2 + $0xa8] sm:$0xff]   ;;  %v2364_v57 = vld [vmem:[#allocation2 + $0xb0] sm:$0xff]   ;;  %v2365_v58 = vld [vmem:[#allocation2 + $0xb8] sm:$0xff]  }
  0x45   :  { %2079 = vmatprep.subr.bf16.mxu0 %v2378_v20  ;;  %v2366_v59 = vld [vmem:[#allocation2 + $0xc0] sm:$0xff]   ;;  %v2599_v60 = vld [vmem:[#allocation7 + $0xe8] sm:$0xff]   ;;  %v2368_v62 = vld [vmem:[#allocation2 + $0xd0] sm:$0xff]  }
  0x46   :  { %v2367_v61 = vld [vmem:[#allocation2 + $0xc8] sm:$0xff]   ;;  %v2369_v63 = vld [vmem:[#allocation2 + $0xd8] sm:$0xff]   ;;  %v2370_v0 = vld [vmem:[#allocation2 + $0xe0] sm:$0xff]  }
  0x47   :  { %2114 = vmatpush3.bf16.msra.mxu1 %v2339_v6  ;;  %v2603_v1 = vld [vmem:[#allocation7 + $0xe0] sm:$0xff]   ;;  %v2371_v2 = vld [vmem:[#allocation2 + $0xe8] sm:$0xff]   ;;  %v2372_v3 = vld [vmem:[#allocation2 + $0xf0] sm:$0xff]  }
  0x48   :  { %2115 = vmatprep.subr.bf16.mxu1 %v2340_v7  ;;  %2080 = vmatpush3.bf16.msra.mxu0 %v2378_v20  ;;  %v2373_v4 = vld [vmem:[#allocation2 + $0xf8] sm:$0xff]   ;;  %v2611_v6 = vld [vmem:[#allocation7 + $0xd0] sm:$0xff]   ;;  %v2402_v19 = vld [vmem:[#allocation7 + $0x68] sm:$0xff]  }
  0x49   :  { %2081 = vmatprep.subr.bf16.mxu0 %v2379_v23  ;;  %v2607_v5 = vld [vmem:[#allocation7 + $0xd8] sm:$0xff]  }
  0x4b   :  { %2116 = vmatpush3.bf16.msra.mxu1 %v2340_v7  ;;  %v2615_v7 = vld [vmem:[#allocation7 + $0xc8] sm:$0xff]  }
  0x4c   :  { %2117 = vmatprep.subr.bf16.mxu1 %v2341_v8  ;;  %2082 = vmatpush3.bf16.msra.mxu0 %v2379_v23 }
  0x4d   :  { %2083 = vmatprep.subr.bf16.mxu0 %v2380_v26 }
  0x4f   :  { %2118 = vmatpush3.bf16.msra.mxu1 %v2341_v8  ;;  %v2619_v8 = vld [vmem:[#allocation7 + $0xc0] sm:$0xff]  }
  0x50   :  { %2311 = vmatprep.subr.bf16.mxu1 %v2591_v24  ;;  %2084 = vmatpush3.bf16.msra.mxu0 %v2380_v26 }
  0x51   :  { %2085 = vmatprep.subr.bf16.mxu0 %v2381_v28 }
  0x52   :  { %2120 = vmatmul.mubr.bf16.vlgmr.msra.gmra.mxu1 %v2343_v9 }
  0x53   :  { %2123 = vmatprep.mubr.bf16.mxu1 %v2344_v10  ;;  %2319 = vmatpush3.bf16.msra.mxu1 %v2591_v24 }
  0x54   :  { %2086 = vmatpush3.bf16.msra.mxu0 %v2381_v28  ;;  %2312 = vmatprep.subr.bf16.mxu1 %v2595_v55  ;;  %v2405_v28 = vld [vmem:[#allocation7 + $0x58] sm:$0xff]  }
  0x55   :  { %2183 = vmatprep.subr.bf16.mxu0 %v2384_v29 }
  0x57   :  { %2088 = vmatmul.mubr.bf16.vlgmr.msra.gmra.mxu0 %v2383_v31  ;;  %2320 = vmatpush3.bf16.msra.mxu1 %v2595_v55 }
  0x58   :  { %2184 = vmatpush3.bf16.msra.mxu0 %v2384_v29  ;;  %2091 = vmatprep.mubr.bf16.mxu0 %v2386_v34 }
  0x59   :  { %2185 = vmatprep.subr.bf16.mxu0 %v2385_v33  ;;  %2313 = vmatprep.subr.bf16.mxu1 %v2599_v60 }
  0x5a   :  { %2124 = vmatmul.mubr.bf16.gmra.mxu1 %v2345_v11 }
  0x5b   :  { %2127 = vmatprep.mubr.bf16.mxu1 %v2346_v12  ;;  %2321 = vmatpush3.bf16.msra.mxu1 %v2599_v60 }
  0x5c   :  { %2186 = vmatpush3.bf16.msra.mxu0 %v2385_v33  ;;  %2314 = vmatprep.subr.bf16.mxu1 %v2603_v1  ;;  %v2406_v33 = vld [vmem:[#allocation7 + $0x50] sm:$0xff]  }
  0x5d   :  { %2187 = vmatprep.subr.bf16.mxu0 %v2388_v35 }
  0x5f   :  { %2092 = vmatmul.mubr.bf16.gmra.mxu0 %v2387_v37  ;;  %2322 = vmatpush3.bf16.msra.mxu1 %v2603_v1 }
  0x60   :  { %2188 = vmatpush3.bf16.msra.mxu0 %v2388_v35  ;;  %2095 = vmatprep.mubr.bf16.mxu0 %v2390_v40 }
  0x61   :  { %2189 = vmatprep.subr.bf16.mxu0 %v2389_v39  ;;  %2315 = vmatprep.subr.bf16.mxu1 %v2607_v5 }
  0x62   :  { %2128 = vmatmul.mubr.bf16.gmra.mxu1 %v2347_v16  ;;  %v2401_v16 = vld [vmem:[#allocation7 + $0x70] sm:$0xff]  }
  0x63   :  { %2131 = vmatprep.mubr.bf16.mxu1 %v2348_v17  ;;  %2323 = vmatpush3.bf16.msra.mxu1 %v2607_v5 }
  0x64   :  { %2190 = vmatpush3.bf16.msra.mxu0 %v2389_v39  ;;  %2316 = vmatprep.subr.bf16.mxu1 %v2611_v6 }
  0x65   :  { %2191 = vmatprep.subr.bf16.mxu0 %v2393_v41 }
  0x67   :  { %2096 = vmatmul.mubr.bf16.gmra.mxu0 %v2392_v43  ;;  %2324 = vmatpush3.bf16.msra.mxu1 %v2611_v6 }
  0x68   :  { %2192 = vmatpush3.bf16.msra.mxu0 %v2393_v41  ;;  %2099 = vmatprep.mubr.bf16.mxu0 %v2395_v48  ;;  %v2408_v41 = vld [vmem:[#allocation7 + $0x40] sm:$0xff]  }
  0x69   :  { %2193 = vmatprep.subr.bf16.mxu0 %v2394_v45  ;;  %2317 = vmatprep.subr.bf16.mxu1 %v2615_v7 }
  0x6a   :  { %2132 = vmatmul.mubr.bf16.gmra.mxu1 %v2349_v21 }
  0x6b   :  { %2135 = vmatprep.mubr.bf16.mxu1 %v2350_v22  ;;  %2325 = vmatpush3.bf16.msra.mxu1 %v2615_v7 }
  0x6c   :  { %2194 = vmatpush3.bf16.msra.mxu0 %v2394_v45  ;;  %2318 = vmatprep.subr.bf16.mxu1 %v2619_v8 }
  0x6d   :  { %2195 = vmatprep.subr.bf16.mxu0 %v2397_v50 }
  0x6f   :  { %2100 = vmatmul.mubr.bf16.gmra.mxu0 %v2396_v49  ;;  %2326 = vmatpush3.bf16.msra.mxu1 %v2619_v8  ;;  %v2411_v49 = vld [vmem:[#allocation7 + $0xb0] sm:$0xff]  }
  0x70   :  { %2196 = vmatpush3.bf16.msra.mxu0 %v2397_v50 }
  0x71   :  { %2197 = vmatprep.subr.bf16.mxu0 %v2398_v52 }
  0x72   :  { %2136 = vmatmul.mubr.bf16.gmra.mxu1 %v2351_v25  ;;  %v2403_v25 = vld [vmem:[#allocation7 + $0x60] sm:$0xff]  }
  0x73   :  { %2139 = vmatprep.mubr.bf16.mxu1 %v2352_v27 }
  0x74   :  { %2198 = vmatpush3.bf16.msra.mxu0 %v2398_v52  ;;  %v2412_v52 = vld [vmem:[#allocation7 + $0xa8] sm:$0xff]  }
  0x75   :  { %2215 = vmatprep.subr.bf16.mxu0 %v2400_v54 }
  0x7a   :  { %2140 = vmatmul.mubr.bf16.gmra.mxu1 %v2353_v30 }
  0x7b   :  { %2143 = vmatprep.mubr.bf16.mxu1 %v2354_v32 }
  0x82   :  { %2144 = vmatmul.mubr.bf16.gmra.mxu1 %v2355_v36  ;;  %v2407_v36 = vld [vmem:[#allocation7 + $0x48] sm:$0xff]  }
  0x83   :  { %2147 = vmatprep.mubr.bf16.mxu1 %v2356_v38 }
  0x8a   :  { %2148 = vmatmul.mubr.bf16.gmra.mxu1 %v2357_v42 }
  0x8b   :  { %2151 = vmatprep.mubr.bf16.mxu1 %v2358_v44  ;;  %v2410_v44 = vld [vmem:[#allocation7 + $0xb8] sm:$0xff]  }
  0x92   :  { %2152 = vmatmul.mubr.bf16.gmra.mxu1 %v2359_v46 }
  0x93   :  { %2155 = vmatprep.mubr.bf16.mxu1 %v2360_v47 }
  0x9a   :  { %2156 = vmatmul.mubr.bf16.gmra.mxu1 %v2361_v51 }
  0x9b   :  { %2159 = vmatprep.mubr.bf16.mxu1 %v2362_v53 }
  0xa2   :  { %2160 = vmatmul.mubr.bf16.gmra.mxu1 %v2363_v56 }
  0xa3   :  { %2163 = vmatprep.mubr.bf16.mxu1 %v2364_v57 }
  0xaa   :  { %2164 = vmatmul.mubr.bf16.gmra.mxu1 %v2365_v58  ;;  %v2413_v58 = vld [vmem:[#allocation7 + $0xa0] sm:$0xff]  }
  0xab   :  { %2167 = vmatprep.mubr.bf16.mxu1 %v2366_v59 }
  0xb2   :  { %2168 = vmatmul.mubr.bf16.gmra.mxu1 %v2367_v61 }
  0xb3   :  { %2171 = vmatprep.mubr.bf16.mxu1 %v2368_v62  ;;  %v2415_v62 = vld [vmem:[#allocation7 + $0x98] sm:$0xff]  }
  0xba   :  { %2172 = vmatmul.mubr.bf16.gmra.mxu1 %v2369_v63 }
  0xbb   :  { %2175 = vmatprep.mubr.bf16.mxu1 %v2370_v0 }
  0xc2   :  { %2176 = vmatmul.mubr.bf16.gmra.mxu1 %v2371_v2 }
  0xc3   :  { %2179 = vmatprep.mubr.bf16.mxu1 %v2372_v3 }
  0xca   :  { %2180 = vmatmul.mubr.bf16.gmra.mxu1 %v2373_v4  ;;  %v2416_v4 = vld [vmem:[#allocation7 + $0x90] sm:$0xff]  }
 0x112   :  { %v2121_v9 = vpop.f32.mrf.mxu1 }
 0x114   :  { %v668_v10 = vpop.f32.mrf.mxu1 }
 0x116   :  { %v2122_v11 = vpop.f32.mrf.mxu1 }
 0x117   :  { %v924_v14 = vpack.c.bf16 %v2122_v11, %v2121_v9  ;;  %v2417_v11 = vld [vmem:[#allocation7 + $0x88] sm:$0xff]  }
 0x118   :  { %v671_v12 = vpop.f32.mrf.mxu1 }
 0x119   :  { %v923_v13 = vpack.c.bf16 %v671_v12, %v668_v10 }
 0x11a   :  { %v2125_v15 = vpop.f32.mrf.mxu1 }
 0x11b   :  { %2199 = vmatprep.mubr.bf16.mxu0 %v923_v13 }
 0x11c   :  { %v684_v17 = vpop.f32.mrf.mxu1  ;;  %2200 = vmatmul.mubr.bf16.vlgmr.msra.gmra.mxu0 %v924_v14 }
 0x11d   :  { %2216 = vmatpush3.bf16.msra.mxu0 %v2400_v54 }
 0x11e   :  { %v2126_v18 = vpop.f32.mrf.mxu1  ;;  %2217 = vmatprep.subr.bf16.mxu0 %v2401_v16 }
 0x11f   :  { %v926_v22 = vpack.c.bf16 %v2126_v18, %v2125_v15 }
 0x120   :  { %v687_v20 = vpop.f32.mrf.mxu1 }
 0x121   :  { %v925_v21 = vpack.c.bf16 %v687_v20, %v684_v17  ;;  %2218 = vmatpush3.bf16.msra.mxu0 %v2401_v16  ;;  %v2418_v16 = vld [vmem:[#allocation7 + $0x80] sm:$0xff]  }
 0x122   :  { %v2129_v23 = vpop.f32.mrf.mxu1  ;;  %2219 = vmatprep.subr.bf16.mxu0 %v2402_v19 }
 0x123   :  { %2203 = vmatprep.mubr.bf16.mxu0 %v925_v21 }
 0x124   :  { %v700_v26 = vpop.f32.mrf.mxu1  ;;  %2204 = vmatmul.mubr.bf16.gmra.mxu0 %v926_v22 }
 0x125   :  { %2220 = vmatpush3.bf16.msra.mxu0 %v2402_v19 }
 0x126   :  { %v2130_v27 = vpop.f32.mrf.mxu1  ;;  %2221 = vmatprep.subr.bf16.mxu0 %v2403_v25 }
 0x127   :  { %v928_v31 = vpack.c.bf16 %v2130_v27, %v2129_v23 }
 0x128   :  { %v703_v29 = vpop.f32.mrf.mxu1 }
 0x129   :  { %v927_v30 = vpack.c.bf16 %v703_v29, %v700_v26  ;;  %2222 = vmatpush3.bf16.msra.mxu0 %v2403_v25 }
 0x12a   :  { %v2133_v32 = vpop.f32.mrf.mxu1  ;;  %2223 = vmatprep.subr.bf16.mxu0 %v2405_v28 }
 0x12b   :  { %2207 = vmatprep.mubr.bf16.mxu0 %v927_v30 }
 0x12c   :  { %v716_v34 = vpop.f32.mrf.mxu1  ;;  %2208 = vmatmul.mubr.bf16.gmra.mxu0 %v928_v31 }
 0x12d   :  { %2224 = vmatpush3.bf16.msra.mxu0 %v2405_v28 }
 0x12e   :  { %v2134_v35 = vpop.f32.mrf.mxu1  ;;  %2225 = vmatprep.subr.bf16.mxu0 %v2406_v33 }
 0x12f   :  { %v930_v39 = vpack.c.bf16 %v2134_v35, %v2133_v32 }
 0x130   :  { %v719_v37 = vpop.f32.mrf.mxu1 }
 0x131   :  { %v929_v38 = vpack.c.bf16 %v719_v37, %v716_v34  ;;  %2226 = vmatpush3.bf16.msra.mxu0 %v2406_v33 }
 0x132   :  { %v2137_v40 = vpop.f32.mrf.mxu1  ;;  %2227 = vmatprep.subr.bf16.mxu0 %v2407_v36 }
 0x133   :  { %2211 = vmatprep.mubr.bf16.mxu0 %v929_v38 }
 0x134   :  { %v732_v42 = vpop.f32.mrf.mxu1  ;;  %2212 = vmatmul.mubr.bf16.gmra.mxu0 %v930_v39 }
 0x135   :  { %2228 = vmatpush3.bf16.msra.mxu0 %v2407_v36 }
 0x136   :  { %v2138_v43 = vpop.f32.mrf.mxu1  ;;  %2229 = vmatprep.subr.bf16.mxu0 %v2408_v41 }
 0x137   :  { %v1109_v47 = vpack.c.bf16 %v2138_v43, %v2137_v40 }
 0x138   :  { %v735_v45 = vpop.f32.mrf.mxu1 }
 0x139   :  { %v1108_v46 = vpack.c.bf16 %v735_v45, %v732_v42  ;;  %2230 = vmatpush3.bf16.msra.mxu0 %v2408_v41 }
 0x13a   :  { %v2141_v48 = vpop.f32.mrf.mxu1  ;;  %2247 = vmatprep.subr.bf16.mxu0 %v2410_v44 }
 0x13b   :  { %2231 = vmatprep.mubr.bf16.mxu0 %v1108_v46 }
 0x13c   :  { %v748_v50 = vpop.f32.mrf.mxu1  ;;  %2232 = vmatmul.mubr.bf16.vlgmr.msra.gmra.mxu0 %v1109_v47 }
 0x13d   :  { %2248 = vmatpush3.bf16.msra.mxu0 %v2410_v44 }
 0x13e   :  { %v2142_v51 = vpop.f32.mrf.mxu1  ;;  %2249 = vmatprep.subr.bf16.mxu0 %v2411_v49 }
 0x13f   :  { %v1111_v56 = vpack.c.bf16 %v2142_v51, %v2141_v48 }
 0x140   :  { %v751_v53 = vpop.f32.mrf.mxu1 }
 0x141   :  { %v1110_v54 = vpack.c.bf16 %v751_v53, %v748_v50  ;;  %2250 = vmatpush3.bf16.msra.mxu0 %v2411_v49 }
 0x142   :  { %v2145_v57 = vpop.f32.mrf.mxu1  ;;  %2251 = vmatprep.subr.bf16.mxu0 %v2412_v52 }
 0x143   :  { %2235 = vmatprep.mubr.bf16.mxu0 %v1110_v54 }
 0x144   :  { %v764_v59 = vpop.f32.mrf.mxu1  ;;  %2236 = vmatmul.mubr.bf16.gmra.mxu0 %v1111_v56 }
 0x145   :  { %2252 = vmatpush3.bf16.msra.mxu0 %v2412_v52 }
 0x146   :  { %v2146_v61 = vpop.f32.mrf.mxu1  ;;  %2253 = vmatprep.subr.bf16.mxu0 %v2413_v58 }
 0x147   :  { %v1113_v2 = vpack.c.bf16 %v2146_v61, %v2145_v57 }
 0x148   :  { %v767_v63 = vpop.f32.mrf.mxu1 }
 0x149   :  { %v1112_v0 = vpack.c.bf16 %v767_v63, %v764_v59  ;;  %2254 = vmatpush3.bf16.msra.mxu0 %v2413_v58  ;;  %v2089_v58 = vpop.f32.mrf.mxu0 }
 0x14a   :  { %v2149_v3 = vpop.f32.mrf.mxu1  ;;  %2255 = vmatprep.subr.bf16.mxu0 %v2415_v62 }
 0x14b   :  { %2239 = vmatprep.mubr.bf16.mxu0 %v1112_v0  ;;  %v251_v59 = vpop.f32.mrf.mxu0 }
 0x14c   :  { %v780_v9 = vpop.f32.mrf.mxu1  ;;  %2240 = vmatmul.mubr.bf16.gmra.mxu0 %v1113_v2 }
 0x14d   :  { %2256 = vmatpush3.bf16.msra.mxu0 %v2415_v62  ;;  %v2090_v61 = vpop.f32.mrf.mxu0 }
 0x14e   :  { %v2150_v10 = vpop.f32.mrf.mxu1  ;;  %2257 = vmatprep.subr.bf16.mxu0 %v2416_v4 }
 0x14f   :  { %v1115_v14 = vpack.c.bf16 %v2150_v10, %v2149_v3  ;;  %v254_v62 = vpop.f32.mrf.mxu0 }
 0x150   :  { %v783_v12 = vpop.f32.mrf.mxu1 }
 0x151   :  { %v1114_v13 = vpack.c.bf16 %v783_v12, %v780_v9  ;;  %2258 = vmatpush3.bf16.msra.mxu0 %v2416_v4  ;;  %v2093_v63 = vpop.f32.mrf.mxu0 }
 0x152   :  { %v2153_v15 = vpop.f32.mrf.mxu1  ;;  %2259 = vmatprep.subr.bf16.mxu0 %v2417_v11 }
 0x153   :  { %2243 = vmatprep.mubr.bf16.mxu0 %v1114_v13  ;;  %v267_v0 = vpop.f32.mrf.mxu0 }
 0x154   :  { %v796_v17 = vpop.f32.mrf.mxu1  ;;  %2244 = vmatmul.mubr.bf16.gmra.mxu0 %v1115_v14 }
 0x155   :  { %2260 = vmatpush3.bf16.msra.mxu0 %v2417_v11  ;;  %v2094_v2 = vpop.f32.mrf.mxu0 }
 0x156   :  { %v2154_v18 = vpop.f32.mrf.mxu1  ;;  %2261 = vmatprep.subr.bf16.mxu0 %v2418_v16 }
 0x157   :  { %v1295_v21 = vpack.c.bf16 %v2154_v18, %v2153_v15  ;;  %v270_v3 = vpop.f32.mrf.mxu0  ;;  %v2642_v15 = vld [vmem:[%s2730_s4] ss:$0 sm:$0xff]  ;;  %s2536_s4 = smov [#allocation10]  }
 0x158   :  { %v799_v19 = vpop.f32.mrf.mxu1  ;;  %s1767_s13 = sshll.u32 %s2536_s4, 4  ;;  %s1768_s13 = int_to_ptr.vmem [resolvable:$true] %s1767_s13 }
 0x159   :  { %v1294_v20 = vpack.c.bf16 %v799_v19, %v796_v17  ;;  %2262 = vmatpush3.bf16.msra.mxu0 %v2418_v16  ;;  %v2097_v4 = vpop.f32.mrf.mxu0  ;;  %v260_v17 = vadd.f32 %v2089_v58, %v2642_v15  ;;  %v252_v19 = vadd.f32 %v2642_v15, %v251_v59  ;;  %s2502_s14 = scalar_lea.vmem %s1768_s13, 1024  ;;  %p2507_p7 = scmp.lt.s32.totalorder %s1768_s13, %s1768_s13 }
 0x15a   :  { %v2157_v22 = vpop.f32.mrf.mxu1  ;;  %2279 = vmatprep.subr.bf16.mxu0 %v2591_v24  ;;  %p2503_p6 = scmp.ne.s32.totalorder %s1768_s13, %s2502_s14  ;;  %p2508_p8 = scmp.lt.s32.totalorder %s2502_s14, %s2502_s14 }
 0x15b   :  { %2263 = vmatprep.mubr.bf16.mxu0 %v1294_v20  ;;  %v283_v9 = vpop.f32.mrf.mxu0 }
 0x15c   :  { %v812_v23 = vpop.f32.mrf.mxu1  ;;  %2264 = vmatmul.mubr.bf16.vlgmr.msra.gmra.mxu0 %v1295_v21  ;;  %p2509_p9 = por %p2508_p8, %p2507_p7 }
 0x15d   :  { %2280 = vmatpush3.bf16.msra.mxu0 %v2591_v24  ;;  %v2098_v10 = vpop.f32.mrf.mxu0 }
 0x15e   :  { %v2158_v25 = vpop.f32.mrf.mxu1  ;;  %2281 = vmatprep.subr.bf16.mxu0 %v2595_v55  ;;  %p2510_p10 = pnand %p2509_p9, %p2503_p6 }
 0x15f   :  { %v1297_v28 = vpack.c.bf16 %v2158_v25, %v2157_v22  ;;  %v286_v11 = vpop.f32.mrf.mxu0  ;;  %v263_v22 = vadd.f32 %v2090_v61, %v2642_v15 }
 0x160   :  { %v815_v26 = vpop.f32.mrf.mxu1 }
 0x161   :  { %v1296_v27 = vpack.c.bf16 %v815_v26, %v812_v23  ;;  %2282 = vmatpush3.bf16.msra.mxu0 %v2595_v55  ;;  %v2101_v12 = vpop.f32.mrf.mxu0  ;;  %v255_v26 = vadd.f32 %v2642_v15, %v254_v62 }
 0x162   :  { %v2161_v29 = vpop.f32.mrf.mxu1  ;;  %2283 = vmatprep.subr.bf16.mxu0 %v2599_v60 }
 0x163   :  { %2267 = vmatprep.mubr.bf16.mxu0 %v1296_v27  ;;  %v299_v13 = vpop.f32.mrf.mxu0 }
 0x164   :  { %v828_v30 = vpop.f32.mrf.mxu1  ;;  %2268 = vmatmul.mubr.bf16.gmra.mxu0 %v1297_v28 }
 0x165   :  { %2284 = vmatpush3.bf16.msra.mxu0 %v2599_v60  ;;  %v2102_v14 = vpop.f32.mrf.mxu0 }
 0x166   :  { %v2162_v31 = vpop.f32.mrf.mxu1  ;;  %2285 = vmatprep.subr.bf16.mxu0 %v2603_v1 }
 0x167   :  { %v1299_v33 = vpack.c.bf16 %v2162_v31, %v2161_v29  ;;  %v2644_v16 = vpop.f32.mrf.mxu0  ;;  %v276_v29 = vadd.f32 %v2093_v63, %v2642_v15 }
 0x168   :  { %v831_v24 = vpop.f32.mrf.mxu1 }
 0x169   :  { %v1298_v32 = vpack.c.bf16 %v831_v24, %v828_v30  ;;  %2286 = vmatpush3.bf16.msra.mxu0 %v2603_v1  ;;  %v268_v24 = vadd.f32 %v2642_v15, %v267_v0 }
 0x16a   :  { %v2165_v34 = vpop.f32.mrf.mxu1  ;;  %2287 = vmatprep.subr.bf16.mxu0 %v2607_v5 }
 0x16b   :  { %2271 = vmatprep.mubr.bf16.mxu0 %v1298_v32 }
 0x16c   :  { %v844_v55 = vpop.f32.mrf.mxu1  ;;  %2272 = vmatmul.mubr.bf16.gmra.mxu0 %v1299_v33 }
 0x16d   :  { %2288 = vmatpush3.bf16.msra.mxu0 %v2607_v5 }
 0x16e   :  { %v2166_v35 = vpop.f32.mrf.mxu1  ;;  %2289 = vmatprep.subr.bf16.mxu0 %v2611_v6 }
 0x16f   :  { %v1301_v37 = vpack.c.bf16 %v2166_v35, %v2165_v34  ;;  %v279_v34 = vadd.f32 %v2094_v2, %v2642_v15 }
 0x170   :  { %v847_v60 = vpop.f32.mrf.mxu1 }
 0x171   :  { %v1300_v36 = vpack.c.bf16 %v847_v60, %v844_v55  ;;  %2290 = vmatpush3.bf16.msra.mxu0 %v2611_v6  ;;  %v271_v60 = vadd.f32 %v2642_v15, %v270_v3 }
 0x172   :  { %v2169_v38 = vpop.f32.mrf.mxu1  ;;  %2291 = vmatprep.subr.bf16.mxu0 %v2615_v7 }
 0x173   :  { %2275 = vmatprep.mubr.bf16.mxu0 %v1300_v36 }
 0x174   :  { %v860_v1 = vpop.f32.mrf.mxu1  ;;  %2276 = vmatmul.mubr.bf16.gmra.mxu0 %v1301_v37 }
 0x175   :  { %2292 = vmatpush3.bf16.msra.mxu0 %v2615_v7 }
 0x176   :  { %v2170_v39 = vpop.f32.mrf.mxu1  ;;  %2293 = vmatprep.subr.bf16.mxu0 %v2619_v8 }
 0x177   :  { %v1481_v41 = vpack.c.bf16 %v2170_v39, %v2169_v38  ;;  %v292_v38 = vadd.f32 %v2097_v4, %v2642_v15 }
 0x178   :  { %v863_v5 = vpop.f32.mrf.mxu1 }
 0x179   :  { %v1480_v40 = vpack.c.bf16 %v863_v5, %v860_v1  ;;  %2294 = vmatpush3.bf16.msra.mxu0 %v2619_v8  ;;  %v284_v5 = vadd.f32 %v2642_v15, %v283_v9 }
 0x17a   :  { %v2173_v42 = vpop.f32.mrf.mxu1 }
 0x17b   :  { %2295 = vmatprep.mubr.bf16.mxu0 %v1480_v40 }
 0x17c   :  { %v876_v6 = vpop.f32.mrf.mxu1  ;;  %2296 = vmatmul.mubr.bf16.vlgmr.msra.gmra.mxu0 %v1481_v41 }
 0x17e   :  { %v2174_v43 = vpop.f32.mrf.mxu1 }
 0x17f   :  { %v1483_v46 = vpack.c.bf16 %v2174_v43, %v2173_v42  ;;  %v295_v42 = vadd.f32 %v2098_v10, %v2642_v15 }
 0x180   :  { %v879_v44 = vpop.f32.mrf.mxu1 }
 0x181   :  { %v1482_v45 = vpack.c.bf16 %v879_v44, %v876_v6  ;;  %v287_v44 = vadd.f32 %v2642_v15, %v286_v11 }
 0x182   :  { %v2177_v47 = vpop.f32.mrf.mxu1 }
 0x183   :  { %2299 = vmatprep.mubr.bf16.mxu0 %v1482_v45 }
 0x184   :  { %v892_v48 = vpop.f32.mrf.mxu1  ;;  %2300 = vmatmul.mubr.bf16.gmra.mxu0 %v1483_v46 }
 0x186   :  { %v2178_v7 = vpop.f32.mrf.mxu1 }
 0x187   :  { %v1485_v51 = vpack.c.bf16 %v2178_v7, %v2177_v47  ;;  %v308_v47 = vadd.f32 %v2101_v12, %v2642_v15 }
 0x188   :  { %v895_v49 = vpop.f32.mrf.mxu1 }
 0x189   :  { %v1484_v50 = vpack.c.bf16 %v895_v49, %v892_v48  ;;  %v300_v49 = vadd.f32 %v2642_v15, %v299_v13 }
 0x18a   :  { %v2181_v52 = vpop.f32.mrf.mxu1 }
 0x18b   :  { %2303 = vmatprep.mubr.bf16.mxu1 %v1484_v50 }
 0x18c   :  { %v908_v8 = vpop.f32.mrf.mxu1  ;;  %2304 = vmatmul.mubr.bf16.vlgmr.msra.gmra.mxu1 %v1485_v51 }
 0x18e   :  { %v2182_v53 = vpop.f32.mrf.mxu1 }
 0x18f   :  { %v1487_v57 = vpack.c.bf16 %v2182_v53, %v2181_v52  ;;  %v311_v52 = vadd.f32 %v2102_v14, %v2642_v15 }
 0x190   :  { %v911_v54 = vpop.f32.mrf.mxu1 }
 0x191   :  { %v1486_v56 = vpack.c.bf16 %v911_v54, %v908_v8 }
 0x193   :  { %2307 = vmatprep.mubr.bf16.mxu1 %v1486_v56 }
 0x194   :  { %2308 = vmatmul.mubr.bf16.gmra.mxu1 %v1487_v57 }
 0x1dc   :  { %v2201_v18 = vpop.f32.mrf.mxu0 }
 0x1dd   :  { %v1094_v20 = vadd.f32 %v2201_v18, %v260_v17 }
 0x1de   :  { %v1029_v21 = vpop.f32.mrf.mxu0 }
 0x1df   :  { %v1092_v23 = vadd.f32 %v1029_v21, %v252_v19 }
 0x1e0   :  { %v2202_v25 = vpop.f32.mrf.mxu0 }
 0x1e1   :  { %v2650_v27 = vadd.f32 %v2202_v25, %v263_v22 }
 0x1e2   :  { %v1032_v28 = vpop.f32.mrf.mxu0 }
 0x1e3   :  { %v2653_v30 = vadd.f32 %v1032_v28, %v255_v26 }
 0x1e4   :  { %v2205_v31 = vpop.f32.mrf.mxu0 }
 0x1e5   :  { %v1098_v32 = vadd.f32 %v2205_v31, %v276_v29 }
 0x1e6   :  { %v1045_v33 = vpop.f32.mrf.mxu0 }
 0x1e7   :  { %v1096_v55 = vadd.f32 %v1045_v33, %v268_v24 }
 0x1e8   :  { %v2206_v35 = vpop.f32.mrf.mxu0 }
 0x1e9   :  { %v2658_v36 = vadd.f32 %v2206_v35, %v279_v34 }
 0x1ea   :  { %v1048_v37 = vpop.f32.mrf.mxu0 }
 0x1eb   :  { %v2661_v1 = vadd.f32 %v1048_v37, %v271_v60 }
 0x1ec   :  { %v2209_v39 = vpop.f32.mrf.mxu0 }
 0x1ed   :  { %v1102_v40 = vadd.f32 %v2209_v39, %v292_v38 }
 0x1ee   :  { %v1061_v41 = vpop.f32.mrf.mxu0 }
 0x1ef   :  { %v1100_v6 = vadd.f32 %v1061_v41, %v284_v5 }
 0x1f0   :  { %v2210_v43 = vpop.f32.mrf.mxu0 }
 0x1f1   :  { %v2666_v45 = vadd.f32 %v2210_v43, %v295_v42 }
 0x1f2   :  { %v1064_v46 = vpop.f32.mrf.mxu0 }
 0x1f3   :  { %v2669_v48 = vadd.f32 %v1064_v46, %v287_v44 }
 0x1f4   :  { %v2213_v7 = vpop.f32.mrf.mxu0 }
 0x1f5   :  { %v1106_v50 = vadd.f32 %v2213_v7, %v308_v47 }
 0x1f6   :  { %v1077_v51 = vpop.f32.mrf.mxu0 }
 0x1f7   :  { %v1104_v8 = vadd.f32 %v1077_v51, %v300_v49 }
 0x1f8   :  { %v2214_v53 = vpop.f32.mrf.mxu0 }
 0x1f9   :  { %v2673_v54 = vadd.f32 %v2214_v53, %v311_v52 }
 0x1fa   :  { %v2675_v56 = vpop.f32.mrf.mxu0 }
 0x1fc   :  { %v2233_v57 = vpop.f32.mrf.mxu0 }
 0x1fd   :  { %v1280_v58 = vadd.f32 %v2233_v57, %v1094_v20 }
 0x1fe   :  { %v1215_v59 = vpop.f32.mrf.mxu0 }
 0x1ff   :  { %v1278_v61 = vadd.f32 %v1215_v59, %v1092_v23 }
 0x200   :  { %v2234_v62 = vpop.f32.mrf.mxu0 }
 0x201   :  { %v1281_v42 = vadd.f32 %v2234_v62, %v2650_v27 }
 0x202   :  { %v1218_v63 = vpop.f32.mrf.mxu0 }
 0x203   :  { %v1279_v44 = vadd.f32 %v1218_v63, %v2653_v30 }
 0x204   :  { %v2237_v0 = vpop.f32.mrf.mxu0 }
 0x205   :  { %v1284_v2 = vadd.f32 %v2237_v0, %v1098_v32 }
 0x206   :  { %v1231_v3 = vpop.f32.mrf.mxu0 }
 0x207   :  { %v1282_v4 = vadd.f32 %v1231_v3, %v1096_v55 }
 0x208   :  { %v2238_v9 = vpop.f32.mrf.mxu0 }
 0x209   :  { %v1285_v0 = vadd.f32 %v2238_v9, %v2658_v36 }
 0x20a   :  { %v1234_v10 = vpop.f32.mrf.mxu0 }
 0x20b   :  { %v1283_v30 = vadd.f32 %v1234_v10, %v2661_v1 }
 0x20c   :  { %v2241_v11 = vpop.f32.mrf.mxu0 }
 0x20d   :  { %v2677_v12 = vadd.f32 %v2241_v11, %v1102_v40 }
 0x20e   :  { %v1247_v13 = vpop.f32.mrf.mxu0 }
 0x20f   :  { %v2679_v14 = vadd.f32 %v1247_v13, %v1100_v6 }
 0x210   :  { %v2242_v17 = vpop.f32.mrf.mxu0 }
 0x212   :  { %v2681_v18 = vpop.f32.mrf.mxu0 }
 0x214   :  { %v2245_v19 = vpop.f32.mrf.mxu0 }
 0x215   :  { %v2683_v20 = vadd.f32 %v2245_v19, %v1106_v50 }
 0x216   :  { %v1263_v21 = vpop.f32.mrf.mxu0 }
 0x217   :  { %v2685_v22 = vadd.f32 %v1263_v21, %v1104_v8 }
 0x218   :  { %v2687_v23 = vpop.f32.mrf.mxu0 }
 0x21a   :  { %v2689_v25 = vpop.f32.mrf.mxu0 }
 0x21c   :  { %v2265_v26 = vpop.f32.mrf.mxu0 }
 0x21d   :  { %v1466_v6 = vadd.f32 %v2265_v26, %v1280_v58 }
 0x21e   :  { %v1401_v28 = vpop.f32.mrf.mxu0 }
 0x21f   :  { %v1464_v46 = vadd.f32 %v1401_v28, %v1278_v61 }
 0x220   :  { %v2266_v29 = vpop.f32.mrf.mxu0 }
 0x221   :  { %v1467_v47 = vadd.f32 %v2266_v29, %v1281_v42 }
 0x222   :  { %v1404_v31 = vpop.f32.mrf.mxu0 }
 0x223   :  { %v1465_v50 = vadd.f32 %v1404_v31, %v1279_v44 }
 0x224   :  { %v2269_v24 = vpop.f32.mrf.mxu0 }
 0x225   :  { %v1470_v11 = vadd.f32 %v2269_v24, %v1284_v2  ;;  %v1289_v24 = vadd.f32 %v2242_v17, %v2666_v45 }
 0x226   :  { %v1417_v32 = vpop.f32.mrf.mxu0 }
 0x227   :  { %v1468_v63 = vadd.f32 %v1417_v32, %v1282_v4 }
 0x228   :  { %v2270_v33 = vpop.f32.mrf.mxu0 }
 0x229   :  { %v1471_v13 = vadd.f32 %v2270_v33, %v1285_v0  ;;  %v1287_v33 = vadd.f32 %v2681_v18, %v2669_v48 }
 0x22a   :  { %v1420_v34 = vpop.f32.mrf.mxu0 }
 0x22b   :  { %v1469_v28 = vadd.f32 %v1420_v34, %v1283_v30 }
 0x22c   :  { %v2273_v55 = vpop.f32.mrf.mxu0 }
 0x22d   :  { %v1474_v1 = vadd.f32 %v2273_v55, %v2677_v12  ;;  %v303_v12 = vadd.f32 %v2642_v15, %v2644_v16 }
 0x22e   :  { %v1433_v35 = vpop.f32.mrf.mxu0 }
 0x22f   :  { %v1472_v34 = vadd.f32 %v1433_v35, %v2679_v14  ;;  %v1105_v48 = vadd.f32 %v2675_v56, %v303_v12  ;;  %v1293_v14 = vadd.f32 %v2687_v23, %v2673_v54 }
 0x230   :  { %v2274_v60 = vpop.f32.mrf.mxu0 }
 0x232   :  { %v1436_v37 = vpop.f32.mrf.mxu0 }
 0x234   :  { %v2691_v38 = vpop.f32.mrf.mxu0 }
 0x235   :  { %v1478_v35 = vadd.f32 %v2691_v38, %v2683_v20 }
 0x236   :  { %v2693_v39 = vpop.f32.mrf.mxu0 }
 0x237   :  { %v1476_v15 = vadd.f32 %v2693_v39, %v2685_v22 }
 0x238   :  { %v2695_v5 = vpop.f32.mrf.mxu0 }
 0x239   :  { %v1479_v16 = vadd.f32 %v2695_v5, %v1293_v14 }
 0x23a   :  { %v2697_v40 = vpop.f32.mrf.mxu0 }
 0x23c   :  { %v2297_v41 = vpop.f32.mrf.mxu0 }
 0x23d   :  { %v1652_v7 = vadd.f32 %v2297_v41, %v1466_v6 }
 0x23e   :  { %v1587_v43 = vpop.f32.mrf.mxu0 }
 0x23f   :  { %v1650_v51 = vadd.f32 %v1587_v43, %v1464_v46  ;;  %v1668_v53 = vmax.f32 %v1652_v7, 0.0  ;;  %v1475_v43 = vadd.f32 %v2274_v60, %v1289_v24  ;;  %v1473_v7 = vadd.f32 %v1436_v37, %v1287_v33 }
 0x240   :  { %v2298_v49 = vpop.f32.mrf.mxu0 }
 0x241   :  { %v1653_v52 = vadd.f32 %v2298_v49, %v1467_v47  ;;  %v1666_v27 = vmax.f32 %v1650_v51, 0.0 }
 0x242   :  { %v1590_v8 = vpop.f32.mrf.mxu0 }
 0x243   :  { %v1669_v57 = vmax.f32 %v1653_v52, 0.0  ;;  %v1651_v59 = vadd.f32 %v1590_v8, %v1465_v50  ;;  %v1291_v8 = vadd.f32 %v2689_v25, %v1105_v48 }
 0x244   :  { %v2301_v3 = vpop.f32.mrf.mxu0 }
 0x245   :  { %v1912_v58 = vpack.c.bf16 %v1669_v57, %v1668_v53  ;;  %v1667_v62 = vmax.f32 %v1651_v59, 0.0  ;;  %v1656_v21 = vadd.f32 %v2301_v3, %v1470_v11  ;;  %v1477_v54 = vadd.f32 %v2697_v40, %v1291_v8 }
 0x246   :  { %v1603_v61 = vpop.f32.mrf.mxu0 }
 0x247   :  { %1944 = vst [vmem:[#allocation10 + $0x8] sm:$0xff] %v1912_v58   ;;  %v1907_v19 = vpack.c.bf16 %v1667_v62, %v1666_v27  ;;  %v1654_v29 = vadd.f32 %v1603_v61, %v1468_v63  ;;  %v1672_v36 = vmax.f32 %v1656_v21, 0.0 }
 0x248   :  { %v2302_v26 = vpop.f32.mrf.mxu0 }
 0x249   :  { %1908 = vst [vmem:[#allocation10] sm:$0xff] %v1907_v19   ;;  %v1657_v31 = vadd.f32 %v2302_v26, %v1471_v13  ;;  %v1670_v10 = vmax.f32 %v1654_v29, 0.0 }
 0x24a   :  { %v1606_v41 = vpop.f32.mrf.mxu0 }
 0x24b   :  { %v1673_v9 = vmax.f32 %v1657_v31, 0.0  ;;  %v1655_v2 = vadd.f32 %v1606_v41, %v1469_v28 }
 0x24c   :  { %v2305_v42 = vpop.f32.mrf.mxu1 }
 0x24d   :  { %v1922_v4 = vpack.c.bf16 %v1673_v9, %v1672_v36  ;;  %v1671_v32 = vmax.f32 %v1655_v2, 0.0  ;;  %v1660_v46 = vadd.f32 %v2305_v42, %v1474_v1 }
 0x24e   :  { %v1619_v6 = vpop.f32.mrf.mxu1 }
 0x24f   :  { %1946 = vst [vmem:[#allocation10 + $0x18] sm:$0xff] %v1922_v4   ;;  %v1917_v44 = vpack.c.bf16 %v1671_v32, %v1670_v10  ;;  %v1658_v45 = vadd.f32 %v1619_v6, %v1472_v34  ;;  %v1676_v49 = vmax.f32 %v1660_v46, 0.0 }
 0x250   :  { %v2306_v47 = vpop.f32.mrf.mxu1 }
 0x251   :  { %1945 = vst [vmem:[#allocation10 + $0x10] sm:$0xff] %v1917_v44   ;;  %v1661_v17 = vadd.f32 %v2306_v47, %v1475_v43  ;;  %v1674_v60 = vmax.f32 %v1658_v45, 0.0 }
 0x252   :  { %v1622_v55 = vpop.f32.mrf.mxu1 }
 0x253   :  { %v1677_v50 = vmax.f32 %v1661_v17, 0.0  ;;  %v1659_v51 = vadd.f32 %v1622_v55, %v1473_v7 }
 0x254   :  { %v2309_v18 = vpop.f32.mrf.mxu1 }
 0x255   :  { %v1932_v37 = vpack.c.bf16 %v1677_v50, %v1676_v49  ;;  %v1675_v52 = vmax.f32 %v1659_v51, 0.0  ;;  %v1664_v57 = vadd.f32 %v2309_v18, %v1478_v35 }
 0x256   :  { %v1635_v53 = vpop.f32.mrf.mxu1 }
 0x257   :  { %1948 = vst [vmem:[#allocation10 + $0x28] sm:$0xff] %v1932_v37   ;;  %v1927_v56 = vpack.c.bf16 %v1675_v52, %v1674_v60  ;;  %v1662_v23 = vadd.f32 %v1635_v53, %v1476_v15  ;;  %v1680_v0 = vmax.f32 %v1664_v57, 0.0 }
 0x258   :  { %v2310_v59 = vpop.f32.mrf.mxu1 }
 0x259   :  { %1947 = vst [vmem:[#allocation10 + $0x20] sm:$0xff] %v1927_v56   ;;  %v1665_v20 = vadd.f32 %v2310_v59, %v1479_v16  ;;  %v1678_v25 = vmax.f32 %v1662_v23, 0.0 }
 0x25a   :  { %v1638_v38 = vpop.f32.mrf.mxu1 }
 0x25b   :  { %v1681_v3 = vmax.f32 %v1665_v20, 0.0  ;;  %v1663_v11 = vadd.f32 %v1638_v38, %v1477_v54 }
 0x25d   :  { %v1942_v27 = vpack.c.bf16 %v1681_v3, %v1680_v0  ;;  %v1679_v22 = vmax.f32 %v1663_v11, 0.0 }
 0x25f   :  { %1950 = vst [vmem:[#allocation10 + $0x38] sm:$0xff] %v1942_v27   ;;  %v1937_v39 = vpack.c.bf16 %v1679_v22, %v1678_v25 }
 0x261   :  { %1949 = vst [vmem:[#allocation10 + $0x30] sm:$0xff] %v1937_v39  }
 0x262   :  { %2513 = shalt.err (!%p2510_p10)
}
 0x263   :  { %1773 = dma.vmem_to_hbm [thread:$0]  %s1768_s13, 1024, %s2731_s5, [#allocation4], %s2532_s23, %s2532_s23, %s2533_s24  }
 0x264   :  { %2528 = dma.done.wait [#allocation4], 1024  }
 0x265   :  { %2529 = vsyncadd [#allocation4], 4294966272 }
 0x266   :  { %1777 = vsyncpa [#allocation3], 1 }
 0x267   :  { %1778 = vsyncpa [#allocation6], 1 }
 0x268   :  { %1779 = vsyncpa [#allocation9], 1 }
 0x269   :  { %1780 = vsyncpa [#allocation4], 1 }

</bundles_post_ra>
